<compile_context>
chip_gen: v5e
topology: v5e:2x2
jax: 0.10.0
libtpu: 0.0.40
codegen_flags: <defaults>
</compile_context>

<pallas_src>
import math
import jax
import jax.numpy as jnp
from jax.experimental import pallas as pl
from jax.experimental.pallas import tpu as pltpu


def _round_up(n, m):
    return ((n + m - 1) // m) * m


def qnetwork_kernel(x_ref, w1_ref, b1_ref, w2_ref, b2_ref, w3_ref, b3_ref, o_ref):
    # x / weights are bf16 (MXU-native); accumulate, bias-add and ReLU in f32.
    x = x_ref[...]
    h1 = jnp.dot(x, w1_ref[...], preferred_element_type=jnp.float32) + b1_ref[...]
    h1 = jnp.maximum(h1, 0.0).astype(jnp.bfloat16)
    h2 = jnp.dot(h1, w2_ref[...], preferred_element_type=jnp.float32) + b2_ref[...]
    h2 = jnp.maximum(h2, 0.0).astype(jnp.bfloat16)
    o_ref[...] = jnp.dot(h2, w3_ref[...], preferred_element_type=jnp.float32) + b3_ref[...]


def qnetwork_forward(x, params, *, block_rows=512):
    """x: (B, state_size) f32.  params: dict of (w1,b1,w2,b2,w3,b3) in f32.

    Returns (B, action_size) f32 Q-values.

    block_rows: batch tile size.  512 keeps (x tile + out tile) * double
    buffers + the 64x64 weights far under the scoped-VMEM default on
    v5e/v6e/v7x; sweep 256/512/1024 per generation if this ever matters.
    """
    w1, b1, w2, b2, w3, b3 = (params[k] for k in ("w1", "b1", "w2", "b2", "w3", "b3"))
    B, S = x.shape
    H1 = w1.shape[1]
    H2 = w2.shape[1]
    A = w3.shape[1]

    # Batch tile: multiple of 8 (sublane), capped so toy batches don't over-pad.
    tb = min(_round_up(block_rows, 8), _round_up(B, 8))
    Bp = _round_up(B, tb)
    num_tiles = Bp // tb

    x_p = x if Bp == B else jnp.pad(x, ((0, Bp - B), (0, 0)))

    # bf16 operands for the MXU; biases stay f32 (added after f32 accumulation).
    x_bf = x_p.astype(jnp.bfloat16)
    w1_bf = w1.astype(jnp.bfloat16)
    w2_bf = w2.astype(jnp.bfloat16)
    w3_bf = w3.astype(jnp.bfloat16)

    def resident(a):
        # Whole-array block mapped to block (0, ...) on every grid step:
        # DMA'd once, stays VMEM-resident across the whole batch grid.
        zeros = (0,) * a.ndim
        return pl.BlockSpec(a.shape, lambda i, _z=zeros: _z)

    flops = 2 * Bp * (S * H1 + H1 * H2 + H2 * A)
    bytes_accessed = (
        x_bf.size * 2
        + (w1_bf.size + w2_bf.size + w3_bf.size) * 2
        + (b1.size + b2.size + b3.size) * 4
        + Bp * A * 4
    )

    out = pl.pallas_call(
        qnetwork_kernel,
        out_shape=jax.ShapeDtypeStruct((Bp, A), jnp.float32),
        grid=(num_tiles,),
        in_specs=[
            pl.BlockSpec((tb, S), lambda i: (i, 0)),   # x: tiled over the batch
            resident(w1_bf), resident(b1),
            resident(w2_bf), resident(b2),
            resident(w3_bf), resident(b3),
        ],
        out_specs=pl.BlockSpec((tb, A), lambda i: (i, 0)),
        compiler_params=pltpu.CompilerParams(
            dimension_semantics=("parallel",),  # dual-TC sharding on v7x; no-op on v5e/v6e
        ),
        cost_estimate=pl.CostEstimate(
            flops=flops, transcendentals=0, bytes_accessed=bytes_accessed),
    )(x_bf, w1_bf, b1, w2_bf, b2, w3_bf, b3)

    return out[:B]


def init_qnetwork_params(key, state_size, action_size, layer1_size=64, layer2_size=64):
    """Deterministic init matching PyTorch nn.Linear default:
    U(-1/sqrt(fan_in), 1/sqrt(fan_in)) for both weight and bias."""
    keys = jax.random.split(key, 6)

    def linear(kw, kb, fan_in, fan_out):
        bound = 1.0 / math.sqrt(fan_in)
        w = jax.random.uniform(kw, (fan_in, fan_out), jnp.float32, -bound, bound)
        b = jax.random.uniform(kb, (1, fan_out), jnp.float32, -bound, bound)
        return w, b

    w1, b1 = linear(keys[0], keys[1], state_size, layer1_size)
    w2, b2 = linear(keys[2], keys[3], layer1_size, layer2_size)
    w3, b3 = linear(keys[4], keys[5], layer2_size, action_size)
    return {"w1": w1, "b1": b1, "w2": w2, "b2": b2, "w3": w3, "b3": b3}


def _reference_bf16(x, params):
    """Pure-JAX reference with the same bf16-in / f32-accumulate recipe."""
    w1, b1, w2, b2, w3, b3 = (params[k] for k in ("w1", "b1", "w2", "b2", "w3", "b3"))
    h = jnp.dot(x.astype(jnp.bfloat16), w1.astype(jnp.bfloat16),
                preferred_element_type=jnp.float32) + b1
    h = jnp.maximum(h, 0.0).astype(jnp.bfloat16)
    h = jnp.dot(h, w2.astype(jnp.bfloat16),
                preferred_element_type=jnp.float32) + b2
    h = jnp.maximum(h, 0.0).astype(jnp.bfloat16)
    return jnp.dot(h, w3.astype(jnp.bfloat16),
                   preferred_element_type=jnp.float32) + b3


def _reference_f32(x, params):
    r = jnp.maximum(x @ params["w1"] + params["b1"], 0.0)
    r = jnp.maximum(r @ params["w2"] + params["b2"], 0.0)
    return r @ params["w3"] + params["b3"]


if __name__ == "__main__":
    key = jax.random.PRNGKey(0)
    k_param, k_x, k_x2 = jax.random.split(key, 3)

    # Small shapes consistent with the module: state_size=8, action_size=4.
    batch, state_size, action_size = 2, 8, 4
    params = init_qnetwork_params(k_param, state_size, action_size)

    # --- toy batch (single grid step) ---
    x = jax.random.normal(k_x, (batch, state_size), jnp.float32)
    out = qnetwork_forward(x, params)
    jax.block_until_ready(out)
    assert out.shape == (batch, action_size)
    # Tight check vs. the same bf16-in / f32-accumulate math.
    assert jnp.allclose(out, _reference_bf16(x, params), atol=1e-3, rtol=1e-3)
    # Loose check vs. full-f32 math (bf16 operands -> ~8-bit mantissa).
    assert jnp.allclose(out, _reference_f32(x, params), atol=1e-1, rtol=1e-1)

    # --- non-divisible batch with a multi-step grid (exercises tiling + padding) ---
    batch2 = 100
    x2 = jax.random.normal(k_x2, (batch2, state_size), jnp.float32)
    out2 = qnetwork_forward(x2, params, block_rows=8)  # grid of 13 tiles
    jax.block_until_ready(out2)
    assert out2.shape == (batch2, action_size)
    assert jnp.allclose(out2, _reference_bf16(x2, params), atol=1e-3, rtol=1e-3)
    assert jnp.allclose(out2, _reference_f32(x2, params), atol=1e-1, rtol=1e-1)

    print("KERNEL_OK")
</pallas_src>

<mosaic_0001>
module attributes {stable_mosaic.version = 11 : i64} {
  func.func @qnetwork_kernel(%arg0: i32, %arg1: memref<8x8xbf16, #tpu.memory_space<vmem>>, %arg2: memref<8x64xbf16, #tpu.memory_space<vmem>>, %arg3: memref<1x64xf32, #tpu.memory_space<vmem>>, %arg4: memref<64x64xbf16, #tpu.memory_space<vmem>>, %arg5: memref<1x64xf32, #tpu.memory_space<vmem>>, %arg6: memref<64x4xbf16, #tpu.memory_space<vmem>>, %arg7: memref<1x4xf32, #tpu.memory_space<vmem>>, %arg8: memref<8x4xf32, #tpu.memory_space<vmem>>) attributes {dimension_semantics = [#tpu.dimension_semantics<parallel>], iteration_bounds = array<i64: 1>, scalar_prefetch = 0 : i64, scratch_operands = 0 : i64, tpu.core_type = #tpu.core_type<tc>, window_params = [{transform_indices = @transform_0, window_bounds = array<i64: 8, 8>}, {pipeline_mode = #tpu.pipeline_mode<synchronous>, transform_indices = @transform_1, window_bounds = array<i64: 8, 64>}, {pipeline_mode = #tpu.pipeline_mode<synchronous>, transform_indices = @transform_2, window_bounds = array<i64: 1, 64>}, {pipeline_mode = #tpu.pipeline_mode<synchronous>, transform_indices = @transform_3, window_bounds = array<i64: 64, 64>}, {pipeline_mode = #tpu.pipeline_mode<synchronous>, transform_indices = @transform_4, window_bounds = array<i64: 1, 64>}, {pipeline_mode = #tpu.pipeline_mode<synchronous>, transform_indices = @transform_5, window_bounds = array<i64: 64, 4>}, {pipeline_mode = #tpu.pipeline_mode<synchronous>, transform_indices = @transform_6, window_bounds = array<i64: 1, 4>}, {transform_indices = @transform_7, window_bounds = array<i64: 8, 4>}]} {
    %c0 = arith.constant 0 : index
    %c0_0 = arith.constant 0 : index
    %0 = vector.load %arg1[%c0, %c0_0] : memref<8x8xbf16, #tpu.memory_space<vmem>>, vector<8x8xbf16>
    %c0_1 = arith.constant 0 : index
    %c0_2 = arith.constant 0 : index
    %1 = vector.load %arg2[%c0_1, %c0_2] : memref<8x64xbf16, #tpu.memory_space<vmem>>, vector<8x64xbf16>
    %cst = arith.constant dense<0.000000e+00> : vector<8x64xf32>
    %2 = tpu.matmul %0, %1, %cst {dimension_numbers = #tpu.dot_dimension_numbers<[1], [0], [0], [1], [0, 0, 1, 1], [], []>} : vector<8x8xbf16>, vector<8x64xbf16>, vector<8x64xf32> -> vector<8x64xf32>
    %c0_3 = arith.constant 0 : index
    %c0_4 = arith.constant 0 : index
    %3 = vector.load %arg3[%c0_3, %c0_4] : memref<1x64xf32, #tpu.memory_space<vmem>>, vector<1x64xf32>
    %4 = vector.broadcast %3 : vector<1x64xf32> to vector<8x64xf32>
    %5 = arith.addf %2, %4 : vector<8x64xf32>
    %cst_5 = arith.constant 0.000000e+00 : f32
    %6 = vector.broadcast %cst_5 : f32 to vector<8x64xf32>
    %7 = arith.maximumf %5, %6 : vector<8x64xf32>
    %8 = arith.truncf %7 : vector<8x64xf32> to vector<8x64xbf16>
    %c0_6 = arith.constant 0 : index
    %c0_7 = arith.constant 0 : index
    %9 = vector.load %arg4[%c0_6, %c0_7] : memref<64x64xbf16, #tpu.memory_space<vmem>>, vector<64x64xbf16>
    %cst_8 = arith.constant dense<0.000000e+00> : vector<8x64xf32>
    %10 = tpu.matmul %8, %9, %cst_8 {dimension_numbers = #tpu.dot_dimension_numbers<[1], [0], [0], [1], [0, 0, 1, 1], [], []>} : vector<8x64xbf16>, vector<64x64xbf16>, vector<8x64xf32> -> vector<8x64xf32>
    %c0_9 = arith.constant 0 : index
    %c0_10 = arith.constant 0 : index
    %11 = vector.load %arg5[%c0_9, %c0_10] : memref<1x64xf32, #tpu.memory_space<vmem>>, vector<1x64xf32>
    %12 = vector.broadcast %11 : vector<1x64xf32> to vector<8x64xf32>
    %13 = arith.addf %10, %12 : vector<8x64xf32>
    %cst_11 = arith.constant 0.000000e+00 : f32
    %14 = vector.broadcast %cst_11 : f32 to vector<8x64xf32>
    %15 = arith.maximumf %13, %14 : vector<8x64xf32>
    %16 = arith.truncf %15 : vector<8x64xf32> to vector<8x64xbf16>
    %c0_12 = arith.constant 0 : index
    %c0_13 = arith.constant 0 : index
    %17 = vector.load %arg6[%c0_12, %c0_13] : memref<64x4xbf16, #tpu.memory_space<vmem>>, vector<64x4xbf16>
    %cst_14 = arith.constant dense<0.000000e+00> : vector<8x4xf32>
    %18 = tpu.matmul %16, %17, %cst_14 {dimension_numbers = #tpu.dot_dimension_numbers<[1], [0], [0], [1], [0, 0, 1, 1], [], []>} : vector<8x64xbf16>, vector<64x4xbf16>, vector<8x4xf32> -> vector<8x4xf32>
    %c0_15 = arith.constant 0 : index
    %c0_16 = arith.constant 0 : index
    %19 = vector.load %arg7[%c0_15, %c0_16] : memref<1x4xf32, #tpu.memory_space<vmem>>, vector<1x4xf32>
    %20 = vector.broadcast %19 : vector<1x4xf32> to vector<8x4xf32>
    %21 = arith.addf %18, %20 : vector<8x4xf32>
    %c0_17 = arith.constant 0 : index
    %c0_18 = arith.constant 0 : index
    %22 = vector.load %arg8[%c0_17, %c0_18] : memref<8x4xf32, #tpu.memory_space<vmem>>, vector<8x4xf32>
    tpu.vector_store %arg8[%c0_17, %c0_18], %21 {strides = array<i32>} : memref<8x4xf32, #tpu.memory_space<vmem>>, vector<8x4xf32>,
    return
  }
  func.func @transform_0(%arg0: i32) -> (i32, i32) {
    %c0_i32 = arith.constant 0 : i32
    %c0_i32_0 = arith.constant 0 : i32
    return %arg0, %c0_i32 : i32, i32
  }
  func.func @transform_1(%arg0: i32) -> (i32, i32) {
    %c0_i32 = arith.constant 0 : i32
    %c0_i32_0 = arith.constant 0 : i32
    %c0_i32_1 = arith.constant 0 : i32
    return %c0_i32, %c0_i32_0 : i32, i32
  }
  func.func @transform_2(%arg0: i32) -> (i32, i32) {
    %c0_i32 = arith.constant 0 : i32
    %c0_i32_0 = arith.constant 0 : i32
    %c0_i32_1 = arith.constant 0 : i32
    return %c0_i32, %c0_i32_0 : i32, i32
  }
  func.func @transform_3(%arg0: i32) -> (i32, i32) {
    %c0_i32 = arith.constant 0 : i32
    %c0_i32_0 = arith.constant 0 : i32
    %c0_i32_1 = arith.constant 0 : i32
    return %c0_i32, %c0_i32_0 : i32, i32
  }
  func.func @transform_4(%arg0: i32) -> (i32, i32) {
    %c0_i32 = arith.constant 0 : i32
    %c0_i32_0 = arith.constant 0 : i32
    %c0_i32_1 = arith.constant 0 : i32
    return %c0_i32, %c0_i32_0 : i32, i32
  }
  func.func @transform_5(%arg0: i32) -> (i32, i32) {
    %c0_i32 = arith.constant 0 : i32
    %c0_i32_0 = arith.constant 0 : i32
    %c0_i32_1 = arith.constant 0 : i32
    return %c0_i32, %c0_i32_0 : i32, i32
  }
  func.func @transform_6(%arg0: i32) -> (i32, i32) {
    %c0_i32 = arith.constant 0 : i32
    %c0_i32_0 = arith.constant 0 : i32
    %c0_i32_1 = arith.constant 0 : i32
    return %c0_i32, %c0_i32_0 : i32, i32
  }
  func.func @transform_7(%arg0: i32) -> (i32, i32) {
    %c0_i32 = arith.constant 0 : i32
    %c0_i32_0 = arith.constant 0 : i32
    return %arg0, %c0_i32 : i32, i32
  }
}

</mosaic_0001>

<bundles_post_ra>
// kernel: tpu_custom_call.1
= control target key start
LH: loop header
LB: loop body
LE: loop exit
PB: predicated region body
PF: predicated region fallthrough
CT: control target
= control target key end

     0   :  { %12 = vsyncpa [#allocation3], 0  ;;  %s422_s0 = inlined_call_operand.vmem [shape: bf16[8,8], index: 0, kind: input, shape index: {}]   ;;  %s423_s1 = inlined_call_operand.hbm [shape: bf16[8,64], index: 1, kind: input, shape index: {}]   ;;  %s424_s2 = inlined_call_operand.hbm [shape: f32[1,64], index: 2, kind: input, shape index: {}]   ;;  %s425_s3 = inlined_call_operand.vmem [shape: bf16[64,64], index: 3, kind: input, shape index: {}]   ;;  %s426_s4 = inlined_call_operand.hbm [shape: f32[1,64], index: 4, kind: input, shape index: {}]   ;;  %s427_s5 = inlined_call_operand.vmem [shape: bf16[64,4], index: 5, kind: input, shape index: {}]   ;;  %s428_s6 = inlined_call_operand.vmem [shape: f32[1,4], index: 6, kind: input, shape index: {}]   ;;  %s429_s7 = inlined_call_operand.vmem [shape: f32[8,4], index: 7, kind: output, shape index: {}]  }
   0x1   :  { %13 = vsyncpa [#allocation5], 0  ;;  %s32_s26 = sshll.u32 %s424_s2, 4  ;;  %s337_s27 = smov [#allocation4]   ;;  %s33_s26 = int_to_ptr.hbm [resolvable:$true] %s32_s26 }
   0x2   :  { %s34_s28 = sshll.u32 %s337_s27, 4  ;;  %s21_s8 = sshll.u32 %s423_s1, 4  ;;  %s35_s28 = int_to_ptr.vmem [resolvable:$true] %s34_s28  ;;  %s22_s8 = int_to_ptr.hbm [resolvable:$true] %s21_s8 }
   0x3   :  { %37 = dma.hbm_to_vmem [thread:$0]  %s33_s26, 16, %s35_s28, [#allocation5]  }
   0x4   :  { %s338_s9 = smov [#allocation2]   ;;  %s45_s13 = sshll.u32 %s426_s4, 4  ;;  %s46_s13 = int_to_ptr.hbm [resolvable:$true] %s45_s13 }
   0x5   :  { %s23_s10 = sshll.u32 %s338_s9, 4  ;;  %s339_s2 = smov [#allocation6]   ;;  %s24_s10 = int_to_ptr.vmem [resolvable:$true] %s23_s10 }
   0x6   :  { %26 = dma.hbm_to_vmem [thread:$0]  %s22_s8, 64, %s24_s10, [#allocation3]  }
   0x7   :  { %s47_s14 = sshll.u32 %s339_s2, 4  ;;  %s48_s14 = int_to_ptr.vmem [resolvable:$true] %s47_s14 }
   0x8   :  { %50 = dma.hbm_to_vmem [thread:$0]  %s46_s13, 16, %s48_s14, [#allocation5]  }
   0x9   :  { %333 = dma.done.wait [#allocation3], 64  }
   0xa   :  { %334 = vsyncadd [#allocation3], 4294967232 }
   0xb   :  { %335 = dma.done.wait [#allocation5], 32  }
   0xc   :  { %336 = vsyncadd [#allocation5], 4294967264  ;;  %vm78_vm0 = vcmask 1043456   ;;  %v69_v0 = vld [vmem:[#allocation2] sm:$0xf]  ;;  %v250_v1 = vld [vmem:[%s425_s3 + $0x18] sm:$0xff] }
   0xd   :  { %v80_v2 = vsel %vm78_vm0, %v69_v0, 0  ;;  %v68_v3 = vld [vmem:[%s422_s0] sm:$0xf]  ;;  %vm74_vm1 = vcmask 64512   ;;  %141 = vmatpush.bf16.msra.mxu1 %v250_v1  ;;  %v249_v4 = vld [vmem:[%s425_s3 + $0x10] sm:$0xff]  ;;  %v248_v5 = vld [vmem:[%s425_s3 + $0x8] sm:$0xff] }
   0xe   :  { %89 = vmatpush.bf16.msra.mxu0 %v80_v2  ;;  %v247_v6 = vld [vmem:[%s425_s3] sm:$0xff]  ;;  %v254_v7 = vld [vmem:[%s427_s5 + $0x18] sm:$0xff]  ;;  %v253_v8 = vld [vmem:[%s427_s5 + $0x10] sm:$0xff]  ;;  %vm133_vm2 = vcmask 523264   ;;  %vm204_vm3 = vcmask 31744  }
   0xf   :  { %195 = vmatpush.bf16.msra.mxu2 %v254_v7  ;;  %v258_v9 = vld [vmem:[#allocation4] ss:$0 sm:$0xff]  ;;  %v252_v15 = vld [vmem:[%s427_s5 + $0x8] sm:$0xff]  ;;  %v259_v17 = vld [vmem:[#allocation6] ss:$0 sm:$0xff] }
  0x10   :  { %v251_v16 = vld [vmem:[%s427_s5] sm:$0xff] }
  0x11   :  { %212 = vmatmul.msk.bf16.vlgmr.msra.gmra.mxu0 %vm74_vm1, %v68_v3  ;;  %142 = vmatpush.bf16.msra.mxu1 %v249_v4  ;;  %v260_v23 = vld [vmem:[%s428_s6] ss:$0 sm:$0xff] }
  0x13   :  { %196 = vmatpush.bf16.msra.mxu2 %v253_v8 }
  0x15   :  { %143 = vmatpush.bf16.msra.mxu1 %v248_v5 }
  0x17   :  { %197 = vmatpush.bf16.msra.mxu2 %v252_v15 }
  0x19   :  { %144 = vmatpush.bf16.msra.mxu1 %v247_v6 }
  0x1b   :  { %198 = vmatpush.bf16.msra.mxu2 %v251_v16 }
  0x8e   :  { %v91_v10 = vpop.f32.mrf.mxu0 }
  0x8f   :  { %v92_v11 = vadd.f32 %v258_v9, %v91_v10 }
  0x91   :  { %v95_v12 = vmax.f32 %v92_v11, 0.0 }
  0x93   :  { %v96_v13 = vpack.c.bf16 %v95_v12, %v95_v12 }
  0x95   :  { %229 = vmatmul.msk.bf16.vlgmr.msra.gmra.mxu1 %vm133_vm2, %v96_v13 }
  0x96   :  { %v93_v14 = vpop.f32.mrf.mxu0 }
 0x112   :  { %v146_v18 = vpop.f32.mrf.mxu1 }
 0x113   :  { %v147_v19 = vadd.f32 %v259_v17, %v146_v18 }
 0x115   :  { %v150_v20 = vmax.f32 %v147_v19, 0.0 }
 0x117   :  { %v151_v21 = vpack.c.bf16 %v150_v20, %v150_v20 }
 0x119   :  { %246 = vmatmul.msk.bf16.vlgmr.msra.gmra.mxu2 %vm133_vm2, %v151_v21 }
 0x11a   :  { %v148_v22 = vpop.f32.mrf.mxu1 }
 0x19c   :  { %v200_v24 = vpop.f32.mrf.mxu2 }
 0x19d   :  { %v201_v25 = vadd.f32 %v260_v23, %v200_v24 }
 0x19f   :  { %205 = vst.msk [vmem:[%s429_s7] sm:$0xff] %vm204_vm3, %v201_v25 }
 0x1a4   :  { %v202_v26 = vpop.f32.mrf.mxu2 }
 0x1a5   :  { %210 = vsyncpa [#allocation3], 1 }
 0x1a6   :  { %211 = vsyncpa [#allocation5], 1 }

</bundles_post_ra>
